<compile_context>
chip_gen: v6e
topology: v6e:2x2x1
jax: 0.10.0
libtpu: 0.0.40
codegen_flags: <defaults>
</compile_context>

<pallas_src>
import math

import jax
import jax.numpy as jnp
from jax.experimental import pallas as pl
from jax.experimental.pallas import tpu as pltpu


_SUBLANE = 8


def _round_up(x, m):
    return ((x + m - 1) // m) * m


def _cdiv(a, b):
    return -(-a // b)


def _choose_batch_tiling(batch):
    """Return (tb, b_pad). Static, wrapper-side."""
    b8 = _round_up(max(batch, 1), _SUBLANE)
    target_tb = 1024                       # amortizes per-grid-step overhead (v6e/v7x)
    if b8 < 512:
        return b8, b8                      # tiny batch: one grid step, no core split
    # >= 512 rows: use an even number of grid steps (>= 2) so both v7x TensorCores
    # get work; tiles stay near target_tb; waste is < 8 rows per step.
    n_steps = max(2, _cdiv(b8, target_tb))
    if n_steps % 2:
        n_steps += 1
    tb = _round_up(_cdiv(b8, n_steps), _SUBLANE)
    return tb, n_steps * tb


def _make_param_actor_kernel(num_hidden):
    """Kernel closed over the static number of hidden layers.

    Ref order: state, (W_h, b_h) * num_hidden, W_out, W_pass, b_head, out
      W_h   : bf16 [in, out]   (transposed vs PyTorch: x @ W + b)
      b_h   : f32  [1, out]
      W_out : bf16 [h_last, P]
      W_pass: f32  [S, P]      (passthrough kept f32 for residual fidelity)
      b_head: f32  [1, P]      (b_out + b_pass pre-summed)
      state / out : f32
    """

    def kernel(*refs):
        state_f32 = refs[0][...]                          # [TB, S] f32
        state_bf16 = state_f32.astype(jnp.bfloat16)       # hoisted single cast
        x = state_bf16
        idx = 1
        for _ in range(num_hidden):
            w = refs[idx][...]                            # bf16 [in, out]
            b = refs[idx + 1][...]                        # f32  [1, out]
            idx += 2
            # bf16 operands on the MXU, f32 accumulation; bias/ReLU in f32 (VPU).
            y = jnp.dot(x, w, preferred_element_type=jnp.float32) + b
            y = jnp.maximum(y, 0.0)                       # ReLU (module default)
            x = y.astype(jnp.bfloat16)

        w_out = refs[idx][...]                            # bf16 [h_last, P]
        w_pass = refs[idx + 1][...]                       # f32  [S, P]
        b_head = refs[idx + 2][...]                       # f32  [1, P]
        o_ref = refs[idx + 3]

        # Output head: two accumulated matmuls (no concat buffer).
        ap = jnp.dot(x, w_out, preferred_element_type=jnp.float32)
        ap = ap + jnp.dot(state_f32, w_pass, preferred_element_type=jnp.float32)
        ap = ap + b_head

        # squashing_function=True -> sigmoid; tanh form runs on the EUP.
        ap = 0.5 * (jnp.tanh(0.5 * ap) + 1.0)
        o_ref[...] = ap.astype(o_ref.dtype)

    return kernel


def pack_param_actor_params(hidden_params, out_params, pass_params):
    """One-time packing: cast hidden/output weights to bf16 (MXU operands),
    keep biases and the passthrough weight in f32, pre-sum the two head biases.
    No feature-dim padding (weights are full-array VMEM-resident blocks)."""
    packed_hidden = []
    for w, b in hidden_params:
        packed_hidden.append((w.astype(jnp.bfloat16),
                              jnp.reshape(b, (1, -1)).astype(jnp.float32)))

    w_out, b_out = out_params
    w_pass, b_pass = pass_params
    b_head = (jnp.reshape(b_out, (1, -1)) + jnp.reshape(b_pass, (1, -1))).astype(jnp.float32)
    head_params = (w_out.astype(jnp.bfloat16), w_pass.astype(jnp.float32), b_head)
    return packed_hidden, head_params


def param_actor_forward(state, packed_hidden, head_params):
    """Fused ParamActor forward: MLP + (output ⊕ passthrough) head + sigmoid."""
    batch, state_size = state.shape
    w_out, w_pass, b_head = head_params
    p_size = w_out.shape[1]

    tb, b_pad = _choose_batch_tiling(batch)
    state_in = state if b_pad == batch else jnp.pad(state, ((0, b_pad - batch), (0, 0)))

    num_hidden = len(packed_hidden)
    flat_args = [state_in]
    for w, b in packed_hidden:
        flat_args += [w, b]
    flat_args += [w_out, w_pass, b_head]

    def resident(arr):
        # Same block index every grid step -> stays VMEM-resident (no re-DMA).
        return pl.BlockSpec(arr.shape, lambda i: (0, 0))

    in_specs = [pl.BlockSpec((tb, state_size), lambda i: (i, 0))]
    for w, b in packed_hidden:
        in_specs += [resident(w), resident(b)]
    in_specs += [resident(w_out), resident(w_pass), resident(b_head)]

    kernel = _make_param_actor_kernel(num_hidden)

    out = pl.pallas_call(
        kernel,
        out_shape=jax.ShapeDtypeStruct((b_pad, p_size), jnp.float32),
        grid=(b_pad // tb,),
        in_specs=in_specs,
        out_specs=pl.BlockSpec((tb, p_size), lambda i: (i, 0)),
        compiler_params=pltpu.CompilerParams(
            dimension_semantics=("parallel",)),
    )(*flat_args)

    return out if b_pad == batch else out[:batch]


def init_param_actor_params(key, state_size, action_parameter_size, hidden_layers,
                            output_layer_init_std=None):
    """Deterministic init mirroring ParamActor.__init__ (init_type='kaiming', relu).

    PyTorch weight shape is (out, in); we store the transpose [in, out].
    kaiming_normal_(nonlinearity='relu', fan_in): std = sqrt(2 / fan_in).
    Hidden biases zero; output layer ~N(0, std) or zeros; passthrough all zeros.
    """
    hidden_params = []
    in_size = state_size
    for h in hidden_layers:
        key, sub = jax.random.split(key)
        std = math.sqrt(2.0 / in_size)
        w = jax.random.normal(sub, (in_size, h), dtype=jnp.float32) * std
        b = jnp.zeros((1, h), dtype=jnp.float32)
        hidden_params.append((w, b))
        in_size = h

    if output_layer_init_std is not None:
        key, sub = jax.random.split(key)
        w_out = (jax.random.normal(sub, (in_size, action_parameter_size),
                                   dtype=jnp.float32) * output_layer_init_std)
    else:
        w_out = jnp.zeros((in_size, action_parameter_size), dtype=jnp.float32)
    b_out = jnp.zeros((1, action_parameter_size), dtype=jnp.float32)

    # passthrough layer is zero-initialized (weights and bias) per the module.
    w_pass = jnp.zeros((state_size, action_parameter_size), dtype=jnp.float32)
    b_pass = jnp.zeros((1, action_parameter_size), dtype=jnp.float32)

    return hidden_params, (w_out, b_out), (w_pass, b_pass)


def _reference_forward(state, hidden_params, out_params, pass_params):
    x = state
    for w, b in hidden_params:
        x = jnp.maximum(x @ w + b, 0.0)
    ap = x @ out_params[0] + out_params[1]
    ap = ap + state @ pass_params[0] + pass_params[1]
    return jax.nn.sigmoid(ap)


if __name__ == "__main__":
    # Small shapes consistent with the module: flat state-vector MLP.
    batch = 8
    state_size = 32
    hidden_layers = (64, 64)
    action_size = 4                      # unused by forward, kept for parity
    action_parameter_size = 16

    key = jax.random.PRNGKey(0)
    key, k_state = jax.random.split(key)
    state = jax.random.normal(k_state, (batch, state_size), dtype=jnp.float32)

    # output_layer_init_std nonzero so the output is nontrivial (default None
    # would zero-init that layer -> all 0.5 outputs).
    hidden_params, out_params, pass_params = init_param_actor_params(
        key, state_size, action_parameter_size, hidden_layers,
        output_layer_init_std=0.1)

    packed_hidden, head_params = pack_param_actor_params(
        hidden_params, out_params, pass_params)

    out = param_actor_forward(state, packed_hidden, head_params)
    out = jax.block_until_ready(out)

    ref = _reference_forward(state, hidden_params, out_params, pass_params)
    assert out.shape == (batch, action_parameter_size)
    # Hidden-layer matmul operands are bf16 (MXU-native) -> compare against the
    # f32 reference with a correspondingly looser tolerance.
    assert jnp.allclose(out, ref, atol=2e-2, rtol=2e-2), (
        float(jnp.max(jnp.abs(out - ref))))

    print("KERNEL_OK")
</pallas_src>

<mosaic_0001>
module attributes {stable_mosaic.version = 11 : i64} {
  func.func @kernel(%arg0: i32, %arg1: memref<8x32xf32, #tpu.memory_space<vmem>>, %arg2: memref<32x64xbf16, #tpu.memory_space<vmem>>, %arg3: memref<1x64xf32, #tpu.memory_space<vmem>>, %arg4: memref<64x64xbf16, #tpu.memory_space<vmem>>, %arg5: memref<1x64xf32, #tpu.memory_space<vmem>>, %arg6: memref<64x16xbf16, #tpu.memory_space<vmem>>, %arg7: memref<32x16xf32, #tpu.memory_space<vmem>>, %arg8: memref<1x16xf32, #tpu.memory_space<vmem>>, %arg9: memref<8x16xf32, #tpu.memory_space<vmem>>) attributes {dimension_semantics = [#tpu.dimension_semantics<parallel>], iteration_bounds = array<i64: 1>, scalar_prefetch = 0 : i64, scratch_operands = 0 : i64, tpu.core_type = #tpu.core_type<tc>, window_params = [{transform_indices = @transform_0, window_bounds = array<i64: 8, 32>}, {pipeline_mode = #tpu.pipeline_mode<synchronous>, transform_indices = @transform_1, window_bounds = array<i64: 32, 64>}, {pipeline_mode = #tpu.pipeline_mode<synchronous>, transform_indices = @transform_2, window_bounds = array<i64: 1, 64>}, {pipeline_mode = #tpu.pipeline_mode<synchronous>, transform_indices = @transform_3, window_bounds = array<i64: 64, 64>}, {pipeline_mode = #tpu.pipeline_mode<synchronous>, transform_indices = @transform_4, window_bounds = array<i64: 1, 64>}, {pipeline_mode = #tpu.pipeline_mode<synchronous>, transform_indices = @transform_5, window_bounds = array<i64: 64, 16>}, {pipeline_mode = #tpu.pipeline_mode<synchronous>, transform_indices = @transform_6, window_bounds = array<i64: 32, 16>}, {pipeline_mode = #tpu.pipeline_mode<synchronous>, transform_indices = @transform_7, window_bounds = array<i64: 1, 16>}, {transform_indices = @transform_8, window_bounds = array<i64: 8, 16>}]} {
    %c0 = arith.constant 0 : index
    %c0_0 = arith.constant 0 : index
    %0 = vector.load %arg1[%c0, %c0_0] : memref<8x32xf32, #tpu.memory_space<vmem>>, vector<8x32xf32>
    %1 = arith.truncf %0 : vector<8x32xf32> to vector<8x32xbf16>
    %c0_1 = arith.constant 0 : index
    %c0_2 = arith.constant 0 : index
    %2 = vector.load %arg2[%c0_1, %c0_2] : memref<32x64xbf16, #tpu.memory_space<vmem>>, vector<32x64xbf16>
    %c0_3 = arith.constant 0 : index
    %c0_4 = arith.constant 0 : index
    %3 = vector.load %arg3[%c0_3, %c0_4] : memref<1x64xf32, #tpu.memory_space<vmem>>, vector<1x64xf32>
    %cst = arith.constant dense<0.000000e+00> : vector<8x64xf32>
    %4 = tpu.matmul %1, %2, %cst {dimension_numbers = #tpu.dot_dimension_numbers<[1], [0], [0], [1], [0, 0, 1, 1], [], []>} : vector<8x32xbf16>, vector<32x64xbf16>, vector<8x64xf32> -> vector<8x64xf32>
    %5 = vector.broadcast %3 : vector<1x64xf32> to vector<8x64xf32>
    %6 = arith.addf %4, %5 : vector<8x64xf32>
    %cst_5 = arith.constant 0.000000e+00 : f32
    %7 = vector.broadcast %cst_5 : f32 to vector<8x64xf32>
    %8 = arith.maximumf %6, %7 : vector<8x64xf32>
    %9 = arith.truncf %8 : vector<8x64xf32> to vector<8x64xbf16>
    %c0_6 = arith.constant 0 : index
    %c0_7 = arith.constant 0 : index
    %10 = vector.load %arg4[%c0_6, %c0_7] : memref<64x64xbf16, #tpu.memory_space<vmem>>, vector<64x64xbf16>
    %c0_8 = arith.constant 0 : index
    %c0_9 = arith.constant 0 : index
    %11 = vector.load %arg5[%c0_8, %c0_9] : memref<1x64xf32, #tpu.memory_space<vmem>>, vector<1x64xf32>
    %cst_10 = arith.constant dense<0.000000e+00> : vector<8x64xf32>
    %12 = tpu.matmul %9, %10, %cst_10 {dimension_numbers = #tpu.dot_dimension_numbers<[1], [0], [0], [1], [0, 0, 1, 1], [], []>} : vector<8x64xbf16>, vector<64x64xbf16>, vector<8x64xf32> -> vector<8x64xf32>
    %13 = vector.broadcast %11 : vector<1x64xf32> to vector<8x64xf32>
    %14 = arith.addf %12, %13 : vector<8x64xf32>
    %cst_11 = arith.constant 0.000000e+00 : f32
    %15 = vector.broadcast %cst_11 : f32 to vector<8x64xf32>
    %16 = arith.maximumf %14, %15 : vector<8x64xf32>
    %17 = arith.truncf %16 : vector<8x64xf32> to vector<8x64xbf16>
    %c0_12 = arith.constant 0 : index
    %c0_13 = arith.constant 0 : index
    %18 = vector.load %arg6[%c0_12, %c0_13] : memref<64x16xbf16, #tpu.memory_space<vmem>>, vector<64x16xbf16>
    %c0_14 = arith.constant 0 : index
    %c0_15 = arith.constant 0 : index
    %19 = vector.load %arg7[%c0_14, %c0_15] : memref<32x16xf32, #tpu.memory_space<vmem>>, vector<32x16xf32>
    %c0_16 = arith.constant 0 : index
    %c0_17 = arith.constant 0 : index
    %20 = vector.load %arg8[%c0_16, %c0_17] : memref<1x16xf32, #tpu.memory_space<vmem>>, vector<1x16xf32>
    %cst_18 = arith.constant dense<0.000000e+00> : vector<8x16xf32>
    %21 = tpu.matmul %17, %18, %cst_18 {dimension_numbers = #tpu.dot_dimension_numbers<[1], [0], [0], [1], [0, 0, 1, 1], [], []>} : vector<8x64xbf16>, vector<64x16xbf16>, vector<8x16xf32> -> vector<8x16xf32>
    %cst_19 = arith.constant dense<0.000000e+00> : vector<8x16xf32>
    %22 = tpu.matmul %0, %19, %cst_19 {dimension_numbers = #tpu.dot_dimension_numbers<[1], [0], [0], [1], [0, 0, 1, 1], [], []>} : vector<8x32xf32>, vector<32x16xf32>, vector<8x16xf32> -> vector<8x16xf32>
    %23 = arith.addf %21, %22 : vector<8x16xf32>
    %24 = vector.broadcast %20 : vector<1x16xf32> to vector<8x16xf32>
    %25 = arith.addf %23, %24 : vector<8x16xf32>
    %cst_20 = arith.constant 5.000000e-01 : f32
    %26 = vector.broadcast %cst_20 : f32 to vector<8x16xf32>
    %27 = arith.mulf %26, %25 : vector<8x16xf32>
    %28 = math.tanh %27 : vector<8x16xf32>
    %cst_21 = arith.constant 1.000000e+00 : f32
    %29 = vector.broadcast %cst_21 : f32 to vector<8x16xf32>
    %30 = arith.addf %28, %29 : vector<8x16xf32>
    %cst_22 = arith.constant 5.000000e-01 : f32
    %31 = vector.broadcast %cst_22 : f32 to vector<8x16xf32>
    %32 = arith.mulf %31, %30 : vector<8x16xf32>
    %c0_23 = arith.constant 0 : index
    %c0_24 = arith.constant 0 : index
    %33 = vector.load %arg9[%c0_23, %c0_24] : memref<8x16xf32, #tpu.memory_space<vmem>>, vector<8x16xf32>
    tpu.vector_store %arg9[%c0_23, %c0_24], %32 {strides = array<i32>} : memref<8x16xf32, #tpu.memory_space<vmem>>, vector<8x16xf32>,
    return
  }
  func.func @transform_0(%arg0: i32) -> (i32, i32) {
    %c0_i32 = arith.constant 0 : i32
    %c0_i32_0 = arith.constant 0 : i32
    return %arg0, %c0_i32 : i32, i32
  }
  func.func @transform_1(%arg0: i32) -> (i32, i32) {
    %c0_i32 = arith.constant 0 : i32
    %c0_i32_0 = arith.constant 0 : i32
    %c0_i32_1 = arith.constant 0 : i32
    return %c0_i32, %c0_i32_0 : i32, i32
  }
  func.func @transform_2(%arg0: i32) -> (i32, i32) {
    %c0_i32 = arith.constant 0 : i32
    %c0_i32_0 = arith.constant 0 : i32
    %c0_i32_1 = arith.constant 0 : i32
    return %c0_i32, %c0_i32_0 : i32, i32
  }
  func.func @transform_3(%arg0: i32) -> (i32, i32) {
    %c0_i32 = arith.constant 0 : i32
    %c0_i32_0 = arith.constant 0 : i32
    %c0_i32_1 = arith.constant 0 : i32
    return %c0_i32, %c0_i32_0 : i32, i32
  }
  func.func @transform_4(%arg0: i32) -> (i32, i32) {
    %c0_i32 = arith.constant 0 : i32
    %c0_i32_0 = arith.constant 0 : i32
    %c0_i32_1 = arith.constant 0 : i32
    return %c0_i32, %c0_i32_0 : i32, i32
  }
  func.func @transform_5(%arg0: i32) -> (i32, i32) {
    %c0_i32 = arith.constant 0 : i32
    %c0_i32_0 = arith.constant 0 : i32
    %c0_i32_1 = arith.constant 0 : i32
    return %c0_i32, %c0_i32_0 : i32, i32
  }
  func.func @transform_6(%arg0: i32) -> (i32, i32) {
    %c0_i32 = arith.constant 0 : i32
    %c0_i32_0 = arith.constant 0 : i32
    %c0_i32_1 = arith.constant 0 : i32
    return %c0_i32, %c0_i32_0 : i32, i32
  }
  func.func @transform_7(%arg0: i32) -> (i32, i32) {
    %c0_i32 = arith.constant 0 : i32
    %c0_i32_0 = arith.constant 0 : i32
    %c0_i32_1 = arith.constant 0 : i32
    return %c0_i32, %c0_i32_0 : i32, i32
  }
  func.func @transform_8(%arg0: i32) -> (i32, i32) {
    %c0_i32 = arith.constant 0 : i32
    %c0_i32_0 = arith.constant 0 : i32
    return %arg0, %c0_i32 : i32, i32
  }
}

</mosaic_0001>

<bundles_post_ra>
// kernel: tpu_custom_call.1
= control target key start
LH: loop header
LB: loop body
LE: loop exit
PB: predicated region body
PF: predicated region fallthrough
CT: control target
= control target key end

     0   :  { %v482_v1 = vmov 0.0   ;;  %vm483_vm0 = vmmov 0   ;;  %vm56_vm1 = vcmask 261120   ;;  %s595_s0 = inlined_call_operand.vmem [shape: f32[8,32], index: 0, kind: input, shape index: {}]   ;;  %s596_s1 = inlined_call_operand.vmem [shape: bf16[32,64], index: 1, kind: input, shape index: {}]   ;;  %s597_s2 = inlined_call_operand.vmem [shape: f32[1,64], index: 2, kind: input, shape index: {}]   ;;  %s598_s3 = inlined_call_operand.vmem [shape: bf16[64,64], index: 3, kind: input, shape index: {}]   ;;  %s599_s4 = inlined_call_operand.vmem [shape: f32[1,64], index: 4, kind: input, shape index: {}]   ;;  %s600_s5 = inlined_call_operand.vmem [shape: bf16[64,16], index: 5, kind: input, shape index: {}]   ;;  %s601_s6 = inlined_call_operand.vmem [shape: f32[32,16], index: 6, kind: input, shape index: {}]   ;;  %s602_s7 = inlined_call_operand.vmem [shape: f32[1,16], index: 7, kind: input, shape index: {}]   ;;  %s603_s8 = inlined_call_operand.hbm [shape: f32[8,16], index: 8, kind: output, shape index: {}]  }
   0x1   :  { %v448_v0 = vld [vmem:[%s596_s1 + $0x8] sm:$0xff]   ;;  %402 = vmatprep.subr.bf16.mxu1 %v482_v1  ;;  %v449_v2 = vld [vmem:[%s596_s1] sm:$0xff]   ;;  %422 = vmatprep.subr.mxu0 %v482_v1  ;;  %v450_v4 = vld [vmem:[%s598_s3 + $0x18] sm:$0xff]  }
   0x2   :  { %403 = vmatpush3.bf16.msra.mxu1 %v448_v0  ;;  %406 = vmatprep.mubr.msk.bf16.mxu1 %vm483_vm0, %v482_v1  ;;  %v31_v3 = vld [vmem:[%s595_s0] sm:$0xff] }
   0x3   :  { %404 = vmatprep.subr.bf16.mxu1 %v482_v1  ;;  %430 = vmatprep.mubr.msk.f32.mxu0 %vm483_vm0, %v482_v1  ;;  %v32_v5 = vpack.c.bf16 %v31_v3, %v31_v3 }
   0x6   :  { %405 = vmatpush3.bf16.msra.mxu1 %v449_v2 }
   0x7   :  { %410 = vmatprep.subr.bf16.mxu1 %v482_v1 }
   0x8   :  { %13 = vsyncpa [#allocation3], 0  ;;  %v451_v6 = vld [vmem:[%s598_s3 + $0x10] sm:$0xff]   ;;  %v452_v7 = vld [vmem:[%s598_s3 + $0x8] sm:$0xff]   ;;  %vm141_vm2 = vcmask 523264   ;;  %vm351_vm3 = vcmask 130048  }
   0x9   :  { %407 = vmatmul.mubr.msk.bf16.vlgmr.msra.gmra.mxu1 %vm56_vm1, %v32_v5  ;;  %v453_v8 = vld [vmem:[%s598_s3] sm:$0xff]   ;;  %v198_v9 = vld [vmem:[%s601_s6 + $0x18] sm:$0xff]  ;;  %v197_v10 = vld [vmem:[%s601_s6 + $0x10] sm:$0xff] }
   0xa   :  { %411 = vmatpush3.bf16.msra.mxu1 %v450_v4  ;;  %418 = vmatprep.mubr.msk.bf16.mxu1 %vm483_vm0, %v482_v1  ;;  %v196_v11 = vld [vmem:[%s601_s6 + $0x8] sm:$0xff]  ;;  %v195_v12 = vld [vmem:[%s601_s6] sm:$0xff]  ;;  %v454_v13 = vld [vmem:[%s600_s5 + $0x18] sm:$0xff]  }
   0xb   :  { %412 = vmatprep.subr.bf16.mxu1 %v482_v1  ;;  %423 = vmatpush3.msra.mxu0 %v198_v9  ;;  %v455_v14 = vld [vmem:[%s600_s5 + $0x10] sm:$0xff]   ;;  %v367_v15 = vld [vmem:[%s597_s2] ss:$0 sm:$0xff]  ;;  %v456_v23 = vld [vmem:[%s600_s5 + $0x8] sm:$0xff]  }
   0xc   :  { %424 = vmatprep.subr.mxu0 %v482_v1  ;;  %v457_v24 = vld [vmem:[%s600_s5] sm:$0xff]  }
   0xd   :  { %425 = vmatpush3.msra.mxu0 %v197_v10  ;;  %v371_v27 = vld [vmem:[%s599_s4] ss:$0 sm:$0xff]  ;;  %s484_s4 = smov [#allocation2]  }
   0xe   :  { %413 = vmatpush3.bf16.msra.mxu1 %v451_v6  ;;  %426 = vmatprep.subr.mxu0 %v482_v1  ;;  %v383_v35 = vld [vmem:[%s602_s7] ss:$0 sm:$0xff]  ;;  %s359_s5 = sshll.u32 %s484_s4, 4  ;;  %s360_s5 = int_to_ptr.vmem [resolvable:$true] %s359_s5 }
   0xf   :  { %414 = vmatprep.subr.bf16.mxu1 %v482_v1  ;;  %427 = vmatpush3.msra.mxu0 %v196_v11  ;;  %s460_s13 = scalar_lea.vmem %s360_s5, 128  ;;  %p465_p1 = scmp.lt.s32.totalorder %s360_s5, %s360_s5 }
  0x10   :  { %428 = vmatprep.subr.mxu0 %v482_v1  ;;  %p461_p0 = scmp.ne.s32.totalorder %s360_s5, %s460_s13  ;;  %p466_p2 = scmp.lt.s32.totalorder %s460_s13, %s460_s13 }
  0x11   :  { %429 = vmatpush3.msra.mxu0 %v195_v12 }
  0x12   :  { %415 = vmatpush3.bf16.msra.mxu1 %v452_v7  ;;  %431 = vmatmul.mubr.msk.f32.vlgmr.msra.gmra.mxu0 %vm56_vm1, %v31_v3  ;;  %p467_p3 = por %p466_p2, %p465_p1 }
  0x13   :  { %416 = vmatprep.subr.bf16.mxu1 %v482_v1  ;;  %433 = vmatprep.subr.bf16.mxu0 %v482_v1 }
  0x14   :  { %434 = vmatpush3.bf16.msra.mxu0 %v454_v13  ;;  %441 = vmatprep.mubr.msk.bf16.mxu0 %vm483_vm0, %v482_v1  ;;  %p468_p4 = pnand %p467_p3, %p461_p0 }
  0x15   :  { %435 = vmatprep.subr.bf16.mxu0 %v482_v1 }
  0x16   :  { %417 = vmatpush3.bf16.msra.mxu1 %v453_v8 }
  0x18   :  { %436 = vmatpush3.bf16.msra.mxu0 %v455_v14 }
  0x19   :  { %437 = vmatprep.subr.bf16.mxu0 %v482_v1 }
  0x1c   :  { %438 = vmatpush3.bf16.msra.mxu0 %v456_v23 }
  0x1d   :  { %439 = vmatprep.subr.bf16.mxu0 %v482_v1 }
  0x20   :  { %440 = vmatpush3.bf16.msra.mxu0 %v457_v24 }
  0xc9   :  { %v94_v16 = vpop.f32.mrf.mxu1 }
  0xca   :  { %v95_v17 = vadd.f32 %v367_v15, %v94_v16 }
  0xcb   :  { %v408_v18 = vpop.f32.mrf.mxu1 }
  0xcc   :  { %v100_v19 = vmax.f32 %v95_v17, 0.0 }
  0xcd   :  { %v97_v20 = vpop.f32.mrf.mxu1 }
  0xce   :  { %v101_v21 = vpack.c.bf16 %v100_v19, %v100_v19 }
  0xcf   :  { %v409_v22 = vpop.f32.mrf.mxu1 }
  0xd0   :  { %419 = vmatmul.mubr.msk.bf16.vlgmr.msra.gmra.mxu1 %vm141_vm2, %v101_v21 }
  0xd2   :  { %v269_v25 = vpop.f32.mrf.mxu0 }
  0xd4   :  { %v432_v26 = vpop.f32.mrf.mxu0 }
 0x190   :  { %v179_v28 = vpop.f32.mrf.mxu1 }
 0x191   :  { %v180_v29 = vadd.f32 %v371_v27, %v179_v28 }
 0x192   :  { %v420_v30 = vpop.f32.mrf.mxu1 }
 0x193   :  { %v185_v31 = vmax.f32 %v180_v29, 0.0 }
 0x194   :  { %v182_v32 = vpop.f32.mrf.mxu1 }
 0x195   :  { %v186_v33 = vpack.c.bf16 %v185_v31, %v185_v31 }
 0x196   :  { %v421_v34 = vpop.f32.mrf.mxu1 }
 0x197   :  { %442 = vmatmul.mubr.msk.bf16.vlgmr.msra.gmra.mxu0 %vm141_vm2, %v186_v33 }
 0x257   :  { %v334_v36 = vpop.f32.mrf.mxu0 }
 0x258   :  { %v335_v37 = vadd.f32 %v334_v36, %v269_v25 }
 0x259   :  { %v443_v38 = vpop.f32.mrf.mxu0 }
 0x25a   :  { %v346_v39 = vadd.f32 %v383_v35, %v335_v37 }
 0x25b   :  { %v337_v40 = vpop.f32.mrf.mxu0 }
 0x25c   :  { %v347_v41 = vmul.f32 0.5, %v346_v39 }
 0x25d   :  { %v444_v42 = vpop.f32.mrf.mxu0 }
 0x25e   :  { %458 = vtanh.f32 %v347_v41 }
 0x26b   :  { %v459_v43 = vpop.eup %458 }
 0x26c   :  { %v349_v44 = vadd.f32 1.0, %v459_v43 }
 0x26e   :  { %v350_v45 = vmul.f32 0.5, %v349_v44 }
 0x270   :  { %352 = vst.msk [vmem:[#allocation2] sm:$0xff] %vm351_vm3, %v350_v45 }
 0x271   :  { %471 = shalt.err (!%p468_p4)
}
 0x272   :  { %362 = dma.vmem_to_hbm [thread:$0]  %s360_s5, 128, %s603_s8, [#allocation3]  }
 0x273   :  { %480 = dma.done.wait [#allocation3], 128  }
 0x274   :  { %481 = vsyncadd [#allocation3], 4294967168 }
 0x275   :  { %366 = vsyncpa [#allocation3], 1 }

</bundles_post_ra>
